<compile_context>
chip_gen: v7x
topology: tpu7x:2x2x1
jax: 0.10.0
libtpu: 0.0.40
codegen_flags: <defaults>
</compile_context>

<pallas_src>
import functools

import jax
import jax.numpy as jnp
from jax import lax
from jax.experimental import pallas as pl
from jax.experimental.pallas import tpu as pltpu

NEG_SLOPE = 0.01  # F.leaky_relu default negative_slope


def _epilogue_dtype():
    """bf16 epilogue on chips with a bf16 VALU path (v6e/v7x), f32 otherwise."""
    kind = jax.devices()[0].device_kind.lower()
    if "v6" in kind or "v7" in kind:
        return jnp.bfloat16
    return jnp.float32


def mlp_kernel(x_ref,
               w1_ref, b1_ref,
               w2_ref, b2_ref,
               w3_ref, b3_ref,
               w4_ref, b4_ref,
               w5_ref, b5_ref,
               o_ref, *, ep_dtype):
    def act(acc_f32, b_ref):
        # bias-add + leaky_relu in ep_dtype; leaky_relu as mul+max (exactly
        # equivalent to the where-form for 0 < slope < 1).
        v = acc_f32.astype(ep_dtype) + b_ref[...]
        return jnp.maximum(v, NEG_SLOPE * v).astype(jnp.bfloat16)

    xb = x_ref[...].astype(jnp.bfloat16)                                  # (TB, 8)
    # Layer 1: contract the shared 8-dim (W1 (128,8) . x_blk (TB,8)^T) so the
    # chain is feature-major (batch on the lane axis) with no transpose pass.
    h = act(lax.dot_general(w1_ref[...], xb, (((1,), (1,)), ((), ())),
                            preferred_element_type=jnp.float32), b1_ref)  # (128, TB)
    h = act(jnp.dot(w2_ref[...], h, preferred_element_type=jnp.float32), b2_ref)
    h = act(jnp.dot(w3_ref[...], h, preferred_element_type=jnp.float32), b3_ref)
    h = act(jnp.dot(w4_ref[...], h, preferred_element_type=jnp.float32), b4_ref)  # (64, TB)
    # Final layer has a single output feature: an M=1/N=1 matmul wastes the
    # MXU, so use a VPU broadcast-multiply + sublane reduction (f32).
    o = jnp.sum(h.astype(jnp.float32) * w5_ref[...], axis=0, keepdims=True) \
        + b5_ref[...]                                                     # (1, TB)
    o_ref[...] = o.astype(o_ref.dtype)


def regression_forward(x, params, *, tile_b=None):
    """x: [B, 8] float32 -> [B, 1] float32 (same semantics as Regression.forward;
    hidden matmuls in bf16 with f32 accumulation). Callers should jit this."""
    B, D_in = x.shape
    (w1, b1), (w2, b2), (w3, b3), (w4, b4), (w5, b5) = params
    assert w1.shape[1] == D_in

    ep_dtype = _epilogue_dtype()

    if tile_b is None:
        # Large lane-dense batch tile; cap at 2048 so even v5e's smaller
        # default scoped VMEM is comfortable (footprint ~3 MB at 2048).
        tile_b = min(pl.cdiv(B, 128) * 128, 2048)
        # Keep >= 2 grid steps when batch permits so v7x's two TensorCores
        # both get work under dimension_semantics=("parallel",).
        if B >= 256 and pl.cdiv(B, tile_b) < 2:
            tile_b = max(128, ((B // 2) // 128) * 128)
    tile_b = max(128, (tile_b // 128) * 128)
    grid = pl.cdiv(B, tile_b)
    Bp = grid * tile_b

    # Weights stay in PyTorch (out, in) layout; hidden weights -> bf16 (MXU
    # dtype), hidden biases -> epilogue dtype, final layer stays f32.
    w1b, w2b, w3b, w4b = (w.astype(jnp.bfloat16) for w in (w1, w2, w3, w4))
    b1c, b2c, b3c, b4c = (b.reshape(-1, 1).astype(ep_dtype)
                          for b in (b1, b2, b3, b4))
    w5c = w5.reshape(-1, 1).astype(jnp.float32)       # (64, 1), used on the VPU
    b5c = b5.reshape(-1, 1).astype(jnp.float32)       # (1, 1)

    def resident(arr):
        # Tiny parameter, same block every grid step -> DMA'd once, resident.
        # TODO(synk): pipeline_mode=pl.Buffered(1) would drop the redundant
        # second buffer (~85 KB); skipped since VMEM is nowhere near binding.
        return pl.BlockSpec(arr.shape, lambda i: (0, 0))

    operands = (x, w1b, b1c, w2b, b2c, w3b, b3c, w4b, b4c, w5c, b5c)
    in_specs = [pl.BlockSpec((tile_b, D_in), lambda i: (i, 0))] + [
        resident(a) for a in operands[1:]
    ]
    out_spec = pl.BlockSpec((1, tile_b), lambda i: (0, i))

    flops = 2 * Bp * (8 * 128 + 128 * 128 + 128 * 128 + 128 * 64 + 64)
    bytes_accessed = (int(x.size) * 4 + Bp * 4
                      + sum(int(a.size) * a.dtype.itemsize for a in operands[1:]))

    out = pl.pallas_call(
        functools.partial(mlp_kernel, ep_dtype=ep_dtype),
        out_shape=jax.ShapeDtypeStruct((1, Bp), jnp.float32),
        grid_spec=pltpu.PrefetchScalarGridSpec(
            num_scalar_prefetch=0,
            grid=(grid,),
            in_specs=in_specs,
            out_specs=out_spec,
        ),
        compiler_params=pltpu.CompilerParams(
            dimension_semantics=("parallel",),
            vmem_limit_bytes=32 * 1024 * 1024),
        cost_estimate=pl.CostEstimate(
            flops=int(flops),
            transcendentals=0,
            bytes_accessed=int(bytes_accessed)),
    )(*operands)

    # Padded tail columns carry garbage (never mixed across columns); drop them.
    return out[:, :B].reshape(B, 1)


def init_params(key):
    """Synthetic params in PyTorch layout: weight (out, in), bias (out,),
    uniform(-1/sqrt(in), 1/sqrt(in)) like nn.Linear's default init."""
    dims = [(8, 128), (128, 128), (128, 128), (128, 64), (64, 1)]
    params = []
    for (d_in, d_out) in dims:
        key, kw, kb = jax.random.split(key, 3)
        bound = 1.0 / jnp.sqrt(jnp.float32(d_in))
        w = jax.random.uniform(kw, (d_out, d_in), jnp.float32, -bound, bound)
        b = jax.random.uniform(kb, (d_out,), jnp.float32, -bound, bound)
        params.append((w, b))
    return params


def reference_forward(x, params, ep_dtype):
    """Pure-JAX reference with the same numerics as the kernel: bf16 weights /
    activations for the four hidden matmuls, f32 accumulation, bias-add +
    leaky_relu in ep_dtype, f32 final layer."""
    h = x.astype(jnp.bfloat16)
    for (w, b) in params[:-1]:
        acc = jnp.dot(h, w.astype(jnp.bfloat16).T,
                      preferred_element_type=jnp.float32)
        v = acc.astype(ep_dtype) + b.astype(ep_dtype).reshape(1, -1)
        h = jnp.maximum(v, NEG_SLOPE * v).astype(jnp.bfloat16)
    w5, b5 = params[-1]
    return (jnp.dot(h.astype(jnp.float32), w5.astype(jnp.float32).T)
            + b5.reshape(1, -1))


if __name__ == "__main__":
    key = jax.random.PRNGKey(0)
    key, kx1, kx2 = jax.random.split(key, 3)
    params = init_params(key)
    ep_dtype = _epilogue_dtype()

    # Small shape consistent with the module (input_dim = 8).
    B = 16
    x = jax.random.normal(kx1, (B, 8), jnp.float32)
    out = jax.block_until_ready(regression_forward(x, params))
    ref = reference_forward(x, params, ep_dtype)
    assert out.shape == (B, 1)
    assert jnp.allclose(out, ref, atol=1e-2, rtol=1e-2), (
        f"max err {jnp.max(jnp.abs(out - ref))}")

    # Exercise the multi-step grid + partial tail-block path.
    B2 = 300
    x2 = jax.random.normal(kx2, (B2, 8), jnp.float32)
    out2 = jax.block_until_ready(regression_forward(x2, params))
    ref2 = reference_forward(x2, params, ep_dtype)
    assert out2.shape == (B2, 1)
    assert jnp.allclose(out2, ref2, atol=1e-2, rtol=1e-2), (
        f"max err {jnp.max(jnp.abs(out2 - ref2))}")

    print("KERNEL_OK")
</pallas_src>

<mosaic_0001>
module attributes {stable_mosaic.version = 11 : i64} {
  func.func @mlp_kernel(%arg0: i32, %arg1: memref<128x8xf32, #tpu.memory_space<vmem>>, %arg2: memref<128x8xbf16, #tpu.memory_space<vmem>>, %arg3: memref<128x1xf32, #tpu.memory_space<vmem>>, %arg4: memref<128x128xbf16, #tpu.memory_space<vmem>>, %arg5: memref<128x1xf32, #tpu.memory_space<vmem>>, %arg6: memref<128x128xbf16, #tpu.memory_space<vmem>>, %arg7: memref<128x1xf32, #tpu.memory_space<vmem>>, %arg8: memref<64x128xbf16, #tpu.memory_space<vmem>>, %arg9: memref<64x1xf32, #tpu.memory_space<vmem>>, %arg10: memref<64x1xf32, #tpu.memory_space<vmem>>, %arg11: memref<1x1xf32, #tpu.memory_space<vmem>>, %arg12: memref<1x128xf32, #tpu.memory_space<vmem>>) attributes {dimension_semantics = [#tpu.dimension_semantics<parallel>], iteration_bounds = array<i64: 1>, scalar_prefetch = 0 : i64, scratch_operands = 0 : i64, tpu.core_type = #tpu.core_type<tc>, window_params = [{transform_indices = @transform_0, window_bounds = array<i64: 128, 8>}, {pipeline_mode = #tpu.pipeline_mode<synchronous>, transform_indices = @transform_1, window_bounds = array<i64: 128, 8>}, {pipeline_mode = #tpu.pipeline_mode<synchronous>, transform_indices = @transform_2, window_bounds = array<i64: 128, 1>}, {pipeline_mode = #tpu.pipeline_mode<synchronous>, transform_indices = @transform_3, window_bounds = array<i64: 128, 128>}, {pipeline_mode = #tpu.pipeline_mode<synchronous>, transform_indices = @transform_4, window_bounds = array<i64: 128, 1>}, {pipeline_mode = #tpu.pipeline_mode<synchronous>, transform_indices = @transform_5, window_bounds = array<i64: 128, 128>}, {pipeline_mode = #tpu.pipeline_mode<synchronous>, transform_indices = @transform_6, window_bounds = array<i64: 128, 1>}, {pipeline_mode = #tpu.pipeline_mode<synchronous>, transform_indices = @transform_7, window_bounds = array<i64: 64, 128>}, {pipeline_mode = #tpu.pipeline_mode<synchronous>, transform_indices = @transform_8, window_bounds = array<i64: 64, 1>}, {pipeline_mode = #tpu.pipeline_mode<synchronous>, transform_indices = @transform_9, window_bounds = array<i64: 64, 1>}, {pipeline_mode = #tpu.pipeline_mode<synchronous>, transform_indices = @transform_10, window_bounds = array<i64: 1, 1>}, {transform_indices = @transform_11, window_bounds = array<i64: 1, 128>}]} {
    %c0 = arith.constant 0 : index
    %c0_0 = arith.constant 0 : index
    %0 = vector.load %arg1[%c0, %c0_0] : memref<128x8xf32, #tpu.memory_space<vmem>>, vector<128x8xf32>
    %1 = arith.truncf %0 : vector<128x8xf32> to vector<128x8xbf16>
    %c0_1 = arith.constant 0 : index
    %c0_2 = arith.constant 0 : index
    %2 = vector.load %arg2[%c0_1, %c0_2] : memref<128x8xbf16, #tpu.memory_space<vmem>>, vector<128x8xbf16>
    %cst = arith.constant dense<0.000000e+00> : vector<128x128xf32>
    %3 = tpu.matmul %2, %1, %cst {dimension_numbers = #tpu.dot_dimension_numbers<[1], [1], [0], [0], [0, 0, 1, 0], [], []>} : vector<128x8xbf16>, vector<128x8xbf16>, vector<128x128xf32> -> vector<128x128xf32>
    %c0_3 = arith.constant 0 : index
    %c0_4 = arith.constant 0 : index
    %4 = vector.load %arg3[%c0_3, %c0_4] : memref<128x1xf32, #tpu.memory_space<vmem>>, vector<128x1xf32>
    %5 = vector.broadcast %4 : vector<128x1xf32> to vector<128x128xf32>
    %6 = arith.addf %3, %5 : vector<128x128xf32>
    %cst_5 = arith.constant 0.00999999977 : f32
    %7 = vector.broadcast %cst_5 : f32 to vector<128x128xf32>
    %8 = arith.mulf %7, %6 : vector<128x128xf32>
    %9 = arith.maximumf %6, %8 : vector<128x128xf32>
    %10 = arith.truncf %9 : vector<128x128xf32> to vector<128x128xbf16>
    %c0_6 = arith.constant 0 : index
    %c0_7 = arith.constant 0 : index
    %11 = vector.load %arg4[%c0_6, %c0_7] : memref<128x128xbf16, #tpu.memory_space<vmem>>, vector<128x128xbf16>
    %cst_8 = arith.constant dense<0.000000e+00> : vector<128x128xf32>
    %12 = tpu.matmul %11, %10, %cst_8 {dimension_numbers = #tpu.dot_dimension_numbers<[1], [0], [0], [1], [0, 0, 1, 1], [], []>} : vector<128x128xbf16>, vector<128x128xbf16>, vector<128x128xf32> -> vector<128x128xf32>
    %c0_9 = arith.constant 0 : index
    %c0_10 = arith.constant 0 : index
    %13 = vector.load %arg5[%c0_9, %c0_10] : memref<128x1xf32, #tpu.memory_space<vmem>>, vector<128x1xf32>
    %14 = vector.broadcast %13 : vector<128x1xf32> to vector<128x128xf32>
    %15 = arith.addf %12, %14 : vector<128x128xf32>
    %cst_11 = arith.constant 0.00999999977 : f32
    %16 = vector.broadcast %cst_11 : f32 to vector<128x128xf32>
    %17 = arith.mulf %16, %15 : vector<128x128xf32>
    %18 = arith.maximumf %15, %17 : vector<128x128xf32>
    %19 = arith.truncf %18 : vector<128x128xf32> to vector<128x128xbf16>
    %c0_12 = arith.constant 0 : index
    %c0_13 = arith.constant 0 : index
    %20 = vector.load %arg6[%c0_12, %c0_13] : memref<128x128xbf16, #tpu.memory_space<vmem>>, vector<128x128xbf16>
    %cst_14 = arith.constant dense<0.000000e+00> : vector<128x128xf32>
    %21 = tpu.matmul %20, %19, %cst_14 {dimension_numbers = #tpu.dot_dimension_numbers<[1], [0], [0], [1], [0, 0, 1, 1], [], []>} : vector<128x128xbf16>, vector<128x128xbf16>, vector<128x128xf32> -> vector<128x128xf32>
    %c0_15 = arith.constant 0 : index
    %c0_16 = arith.constant 0 : index
    %22 = vector.load %arg7[%c0_15, %c0_16] : memref<128x1xf32, #tpu.memory_space<vmem>>, vector<128x1xf32>
    %23 = vector.broadcast %22 : vector<128x1xf32> to vector<128x128xf32>
    %24 = arith.addf %21, %23 : vector<128x128xf32>
    %cst_17 = arith.constant 0.00999999977 : f32
    %25 = vector.broadcast %cst_17 : f32 to vector<128x128xf32>
    %26 = arith.mulf %25, %24 : vector<128x128xf32>
    %27 = arith.maximumf %24, %26 : vector<128x128xf32>
    %28 = arith.truncf %27 : vector<128x128xf32> to vector<128x128xbf16>
    %c0_18 = arith.constant 0 : index
    %c0_19 = arith.constant 0 : index
    %29 = vector.load %arg8[%c0_18, %c0_19] : memref<64x128xbf16, #tpu.memory_space<vmem>>, vector<64x128xbf16>
    %cst_20 = arith.constant dense<0.000000e+00> : vector<64x128xf32>
    %30 = tpu.matmul %29, %28, %cst_20 {dimension_numbers = #tpu.dot_dimension_numbers<[1], [0], [0], [1], [0, 0, 1, 1], [], []>} : vector<64x128xbf16>, vector<128x128xbf16>, vector<64x128xf32> -> vector<64x128xf32>
    %c0_21 = arith.constant 0 : index
    %c0_22 = arith.constant 0 : index
    %31 = vector.load %arg9[%c0_21, %c0_22] : memref<64x1xf32, #tpu.memory_space<vmem>>, vector<64x1xf32>
    %32 = vector.broadcast %31 : vector<64x1xf32> to vector<64x128xf32>
    %33 = arith.addf %30, %32 : vector<64x128xf32>
    %cst_23 = arith.constant 0.00999999977 : f32
    %34 = vector.broadcast %cst_23 : f32 to vector<64x128xf32>
    %35 = arith.mulf %34, %33 : vector<64x128xf32>
    %36 = arith.maximumf %33, %35 : vector<64x128xf32>
    %37 = arith.truncf %36 : vector<64x128xf32> to vector<64x128xbf16>
    %38 = arith.extf %37 : vector<64x128xbf16> to vector<64x128xf32>
    %c0_24 = arith.constant 0 : index
    %c0_25 = arith.constant 0 : index
    %39 = vector.load %arg10[%c0_24, %c0_25] : memref<64x1xf32, #tpu.memory_space<vmem>>, vector<64x1xf32>
    %40 = vector.broadcast %39 : vector<64x1xf32> to vector<64x128xf32>
    %41 = arith.mulf %38, %40 : vector<64x128xf32>
    %cst_26 = arith.constant dense<0.000000e+00> : vector<128xf32>
    %42 = vector.multi_reduction <add>, %41, %cst_26 [0] : vector<64x128xf32> to vector<128xf32>
    %43 = vector.shape_cast %42 : vector<128xf32> to vector<1x128xf32>
    %c0_27 = arith.constant 0 : index
    %c0_28 = arith.constant 0 : index
    %44 = vector.load %arg11[%c0_27, %c0_28] : memref<1x1xf32, #tpu.memory_space<vmem>>, vector<1x1xf32>
    %45 = vector.broadcast %44 : vector<1x1xf32> to vector<1x128xf32>
    %46 = arith.addf %43, %45 : vector<1x128xf32>
    %c0_29 = arith.constant 0 : index
    %c0_30 = arith.constant 0 : index
    %47 = vector.load %arg12[%c0_29, %c0_30] : memref<1x128xf32, #tpu.memory_space<vmem>>, vector<1x128xf32>
    tpu.vector_store %arg12[%c0_29, %c0_30], %46 {strides = array<i32>} : memref<1x128xf32, #tpu.memory_space<vmem>>, vector<1x128xf32>,
    return
  }
  func.func @transform_0(%arg0: i32) -> (i32, i32) {
    %c0_i32 = arith.constant 0 : i32
    %c0_i32_0 = arith.constant 0 : i32
    return %arg0, %c0_i32 : i32, i32
  }
  func.func @transform_1(%arg0: i32) -> (i32, i32) {
    %c0_i32 = arith.constant 0 : i32
    %c0_i32_0 = arith.constant 0 : i32
    %c0_i32_1 = arith.constant 0 : i32
    return %c0_i32, %c0_i32_0 : i32, i32
  }
  func.func @transform_2(%arg0: i32) -> (i32, i32) {
    %c0_i32 = arith.constant 0 : i32
    %c0_i32_0 = arith.constant 0 : i32
    %c0_i32_1 = arith.constant 0 : i32
    return %c0_i32, %c0_i32_0 : i32, i32
  }
  func.func @transform_3(%arg0: i32) -> (i32, i32) {
    %c0_i32 = arith.constant 0 : i32
    %c0_i32_0 = arith.constant 0 : i32
    %c0_i32_1 = arith.constant 0 : i32
    return %c0_i32, %c0_i32_0 : i32, i32
  }
  func.func @transform_4(%arg0: i32) -> (i32, i32) {
    %c0_i32 = arith.constant 0 : i32
    %c0_i32_0 = arith.constant 0 : i32
    %c0_i32_1 = arith.constant 0 : i32
    return %c0_i32, %c0_i32_0 : i32, i32
  }
  func.func @transform_5(%arg0: i32) -> (i32, i32) {
    %c0_i32 = arith.constant 0 : i32
    %c0_i32_0 = arith.constant 0 : i32
    %c0_i32_1 = arith.constant 0 : i32
    return %c0_i32, %c0_i32_0 : i32, i32
  }
  func.func @transform_6(%arg0: i32) -> (i32, i32) {
    %c0_i32 = arith.constant 0 : i32
    %c0_i32_0 = arith.constant 0 : i32
    %c0_i32_1 = arith.constant 0 : i32
    return %c0_i32, %c0_i32_0 : i32, i32
  }
  func.func @transform_7(%arg0: i32) -> (i32, i32) {
    %c0_i32 = arith.constant 0 : i32
    %c0_i32_0 = arith.constant 0 : i32
    %c0_i32_1 = arith.constant 0 : i32
    return %c0_i32, %c0_i32_0 : i32, i32
  }
  func.func @transform_8(%arg0: i32) -> (i32, i32) {
    %c0_i32 = arith.constant 0 : i32
    %c0_i32_0 = arith.constant 0 : i32
    %c0_i32_1 = arith.constant 0 : i32
    return %c0_i32, %c0_i32_0 : i32, i32
  }
  func.func @transform_9(%arg0: i32) -> (i32, i32) {
    %c0_i32 = arith.constant 0 : i32
    %c0_i32_0 = arith.constant 0 : i32
    %c0_i32_1 = arith.constant 0 : i32
    return %c0_i32, %c0_i32_0 : i32, i32
  }
  func.func @transform_10(%arg0: i32) -> (i32, i32) {
    %c0_i32 = arith.constant 0 : i32
    %c0_i32_0 = arith.constant 0 : i32
    %c0_i32_1 = arith.constant 0 : i32
    return %c0_i32, %c0_i32_0 : i32, i32
  }
  func.func @transform_11(%arg0: i32) -> (i32, i32) {
    %c0_i32 = arith.constant 0 : i32
    %c0_i32_0 = arith.constant 0 : i32
    return %c0_i32, %arg0 : i32, i32
  }
}

</mosaic_0001>

<bundles_post_ra>
// kernel: tpu_custom_call.1
= control target key start
LH: loop header
LB: loop body
LE: loop exit
PB: predicated region body
PF: predicated region fallthrough
CT: control target
= control target key end

     0   :  { %s1987_s0 = inlined_call_operand.vmem [shape: f32[16,8], index: 0, kind: input, shape index: {}]   ;;  %s1988_s1 = inlined_call_operand.vmem [shape: bf16[128,8], index: 1, kind: input, shape index: {}]   ;;  %s1989_s2 = inlined_call_operand.vmem [shape: f32[128,1], index: 2, kind: input, shape index: {}]   ;;  %s1990_s3 = inlined_call_operand.vmem [shape: bf16[128,128], index: 3, kind: input, shape index: {}]   ;;  %s1991_s4 = inlined_call_operand.vmem [shape: f32[128,1], index: 4, kind: input, shape index: {}]   ;;  %s1992_s5 = inlined_call_operand.vmem [shape: bf16[128,128], index: 5, kind: input, shape index: {}]   ;;  %s1993_s6 = inlined_call_operand.vmem [shape: f32[128,1], index: 6, kind: input, shape index: {}]   ;;  %s1994_s7 = inlined_call_operand.vmem [shape: bf16[64,128], index: 7, kind: input, shape index: {}]   ;;  %s1995_s8 = inlined_call_operand.vmem [shape: f32[64,1], index: 8, kind: input, shape index: {}]   ;;  %s1996_s9 = inlined_call_operand.vmem [shape: f32[64,1], index: 9, kind: input, shape index: {}]   ;;  %s1997_s10 = inlined_call_operand.<no memory space> [shape: f32[1,1], index: 10, kind: input, shape index: {}]   ;;  %s1998_s11 = inlined_call_operand.hbm [shape: f32[1,128], index: 11, kind: output, shape index: {}]  }
   0x1   :  { %v16_v0 = vstv %s1997_s10 }
   0x2   :  { %17 = vst [vmem:[#allocation2] sm:$0x1] %v16_v0 }
   0x3   :  { %v42_v1 = vld [vmem:[%s1987_s0] sm:$0xff]  ;;  %v43_v2 = vld [vmem:[%s1987_s0 + $0x8] sm:$0xff]  ;;  %vm218_vm0 = vcmask 64512   ;;  %v44_v3 = vld [vmem:[%s1987_s0 + $0x10] sm:$0xff]  ;;  %v1562_v6 = vmov 0  }
   0x4   :  { %v58_v4 = vpack.c.bf16 %v43_v2, %v42_v1  ;;  %v45_v5 = vld [vmem:[%s1987_s0 + $0x18] sm:$0xff]  ;;  %1508 = vset.pattern.permute.xlu0 %v1562_v6  ;;  %1509 = vset.pattern.permute.xlu1 %v1562_v6  ;;  %v82_v8 = vld [vmem:[%s1989_s2] sm:$0xff]  ;;  %v84_v10 = vld [vmem:[%s1989_s2 + $0x10] sm:$0xff] }
   0x5   :  { %v59_v7 = vpack.c.bf16 %v45_v5, %v44_v3  ;;  %100 = vperm.xlu0 %1508, %v82_v8   ;;  %v83_v11 = vld [vmem:[%s1989_s2 + $0x8] sm:$0xff]  ;;  %110 = vperm.xlu1 %1509, %v84_v10   ;;  %v85_v12 = vld [vmem:[%s1989_s2 + $0x18] sm:$0xff]  ;;  %v46_v13 = vld [vmem:[%s1987_s0 + $0x20] sm:$0xff] }
   0x6   :  { %1498 = vmatprep.subr.msk.bf16.mxu0 %vm218_vm0, %v58_v4  ;;  %v244_v9 = vsel %vm218_vm0, %v58_v4, 0  ;;  %v47_v14 = vld [vmem:[%s1987_s0 + $0x28] sm:$0xff]  ;;  %v86_v15 = vld [vmem:[%s1989_s2 + $0x20] sm:$0xff]  ;;  %v88_v19 = vld [vmem:[%s1989_s2 + $0x30] sm:$0xff] }
   0x7   :  { %1363 = vmatpush3.bf16.xpose.msra.mxu0 %v244_v9  ;;  %v247_v16 = vsel %vm218_vm0, %v59_v7, 0  ;;  %v60_v17 = vpack.c.bf16 %v47_v14, %v46_v13  ;;  %v87_v18 = vld [vmem:[%s1989_s2 + $0x28] sm:$0xff]  ;;  %v89_v20 = vld [vmem:[%s1989_s2 + $0x38] sm:$0xff]  ;;  %v1510_v21 = vld [vmem:[%s1988_s1] sm:$0xff]  }
   0x8   :  { %1499 = vmatprep.subr.msk.bf16.mxu0 %vm218_vm0, %v59_v7  ;;  %v48_v22 = vld [vmem:[%s1987_s0 + $0x30] sm:$0xff]  ;;  %v49_v23 = vld [vmem:[%s1987_s0 + $0x38] sm:$0xff]  ;;  %1378 = vmatprep.mubr.msk.bf16.mxu0 %vm218_vm0, %v1510_v21  ;;  %v90_v24 = vld [vmem:[%s1989_s2 + $0x40] sm:$0xff] }
   0x9   :  { %105 = vperm.xlu0 %1508, %v83_v11   ;;  %115 = vperm.xlu1 %1509, %v85_v12   ;;  %v250_v25 = vsel %vm218_vm0, %v60_v17, 0  ;;  %v61_v26 = vpack.c.bf16 %v49_v23, %v48_v22  ;;  %v91_v27 = vld [vmem:[%s1989_s2 + $0x48] sm:$0xff]  ;;  %v92_v28 = vld [vmem:[%s1989_s2 + $0x50] sm:$0xff]  ;;  %v93_v29 = vld [vmem:[%s1989_s2 + $0x58] sm:$0xff] }
   0xa   :  { %v50_v30 = vld [vmem:[%s1987_s0 + $0x40] sm:$0xff]  ;;  %v51_v31 = vld [vmem:[%s1987_s0 + $0x48] sm:$0xff]  ;;  %v52_v36 = vld [vmem:[%s1987_s0 + $0x50] sm:$0xff] }
   0xb   :  { %v94_v32 = vld [vmem:[%s1989_s2 + $0x60] sm:$0xff]  ;;  %v253_v33 = vsel %vm218_vm0, %v61_v26, 0  ;;  %v62_v34 = vpack.c.bf16 %v51_v31, %v50_v30  ;;  %v95_v35 = vld [vmem:[%s1989_s2 + $0x68] sm:$0xff]  ;;  %v53_v37 = vld [vmem:[%s1987_s0 + $0x58] sm:$0xff] }
   0xc   :  { %v96_v38 = vld [vmem:[%s1989_s2 + $0x70] sm:$0xff]  ;;  %v97_v39 = vld [vmem:[%s1989_s2 + $0x78] sm:$0xff]  ;;  %v63_v40 = vpack.c.bf16 %v53_v37, %v52_v36  ;;  %v420_v41 = vld [vmem:[%s1991_s4] sm:$0xff] }
   0xd   :  { %120 = vperm.xlu0 %1508, %v86_v15   ;;  %125 = vperm.xlu1 %1509, %v87_v18   ;;  %v256_v42 = vsel %vm218_vm0, %v62_v34, 0  ;;  %v421_v43 = vld [vmem:[%s1991_s4 + $0x8] sm:$0xff]  ;;  %v422_v45 = vld [vmem:[%s1991_s4 + $0x10] sm:$0xff]  ;;  %v423_v46 = vld [vmem:[%s1991_s4 + $0x18] sm:$0xff] }
   0xe   :  { %v259_v44 = vsel %vm218_vm0, %v63_v40, 0  ;;  %v54_v47 = vld [vmem:[%s1987_s0 + $0x60] sm:$0xff]  ;;  %v55_v48 = vld [vmem:[%s1987_s0 + $0x68] sm:$0xff]  ;;  %v426_v52 = vld [vmem:[%s1991_s4 + $0x30] sm:$0xff] }
   0xf   :  { %1365 = vmatpush3.bf16.xpose.msra.mxu0 %v247_v16  ;;  %v424_v49 = vld [vmem:[%s1991_s4 + $0x20] sm:$0xff]  ;;  %v425_v50 = vld [vmem:[%s1991_s4 + $0x28] sm:$0xff]  ;;  %v64_v51 = vpack.c.bf16 %v55_v48, %v54_v47  ;;  %v427_v53 = vld [vmem:[%s1991_s4 + $0x38] sm:$0xff] }
  0x10   :  { %1500 = vmatprep.subr.msk.bf16.mxu0 %vm218_vm0, %v60_v17  ;;  %v56_v54 = vld [vmem:[%s1987_s0 + $0x70] sm:$0xff]  ;;  %v57_v55 = vld [vmem:[%s1987_s0 + $0x78] sm:$0xff]  ;;  %v428_v56 = vld [vmem:[%s1991_s4 + $0x40] sm:$0xff] }
  0x11   :  { %130 = vperm.xlu0 %1508, %v88_v19   ;;  %135 = vperm.xlu1 %1509, %v89_v20  }
  0x15   :  { %140 = vperm.xlu0 %1508, %v90_v24   ;;  %145 = vperm.xlu1 %1509, %v91_v27  }
  0x17   :  { %1367 = vmatpush3.bf16.xpose.msra.mxu0 %v250_v25 }
  0x18   :  { %1501 = vmatprep.subr.msk.bf16.mxu0 %vm218_vm0, %v61_v26 }
  0x19   :  { %150 = vperm.xlu0 %1508, %v92_v28   ;;  %155 = vperm.xlu1 %1509, %v93_v29  }
  0x1d   :  { %160 = vperm.xlu0 %1508, %v94_v32   ;;  %165 = vperm.xlu1 %1509, %v95_v35  }
  0x1f   :  { %1369 = vmatpush3.bf16.xpose.msra.mxu0 %v253_v33 }
  0x20   :  { %1502 = vmatprep.subr.msk.bf16.mxu0 %vm218_vm0, %v62_v34 }
  0x21   :  { %170 = vperm.xlu0 %1508, %v96_v38   ;;  %175 = vperm.xlu1 %1509, %v97_v39  }
  0x25   :  { %438 = vperm.xlu0 %1508, %v420_v41   ;;  %443 = vperm.xlu1 %1509, %v421_v43  }
  0x27   :  { %1371 = vmatpush3.bf16.xpose.msra.mxu0 %v256_v42 }
  0x28   :  { %1503 = vmatprep.subr.msk.bf16.mxu0 %vm218_vm0, %v63_v40 }
  0x29   :  { %448 = vperm.xlu0 %1508, %v422_v45   ;;  %453 = vperm.xlu1 %1509, %v423_v46  }
  0x2d   :  { %458 = vperm.xlu0 %1508, %v424_v49   ;;  %463 = vperm.xlu1 %1509, %v425_v50  }
  0x2f   :  { %1373 = vmatpush3.bf16.xpose.msra.mxu0 %v259_v44 }
  0x30   :  { %1504 = vmatprep.subr.msk.bf16.mxu0 %vm218_vm0, %v64_v51 }
  0x31   :  { %468 = vperm.xlu0 %1508, %v426_v52   ;;  %473 = vperm.xlu1 %1509, %v427_v53  }
  0x32   :  { %18 = vsyncpa [#allocation4], 0  ;;  %v262_v57 = vsel %vm218_vm0, %v64_v51, 0  ;;  %v65_v58 = vpack.c.bf16 %v57_v55, %v56_v54  ;;  %v429_v59 = vld [vmem:[%s1991_s4 + $0x48] sm:$0xff]  ;;  %v430_v60 = vld [vmem:[%s1991_s4 + $0x50] sm:$0xff] }
  0x33   :  { %v431_v61 = vld [vmem:[%s1991_s4 + $0x58] sm:$0xff]  ;;  %v432_v62 = vld [vmem:[%s1991_s4 + $0x60] sm:$0xff]  ;;  %v433_v0 = vld [vmem:[%s1991_s4 + $0x68] sm:$0xff] }
  0x34   :  { %v265_v63 = vsel %vm218_vm0, %v65_v58, 0  ;;  %v434_v1 = vld [vmem:[%s1991_s4 + $0x70] sm:$0xff]  ;;  %v435_v2 = vld [vmem:[%s1991_s4 + $0x78] sm:$0xff]  ;;  %v1511_v3 = vld [vmem:[%s1988_s1 + $0x8] sm:$0xff]  }
  0x35   :  { %478 = vperm.xlu0 %1508, %v428_v56   ;;  %483 = vperm.xlu1 %1509, %v429_v59   ;;  %v1512_v4 = vld [vmem:[%s1988_s1 + $0x10] sm:$0xff]   ;;  %v717_v5 = vld [vmem:[%s1993_s6] sm:$0xff]  ;;  %v718_v6 = vld [vmem:[%s1993_s6 + $0x8] sm:$0xff] }
  0x36   :  { %v719_v7 = vld [vmem:[%s1993_s6 + $0x10] sm:$0xff]  ;;  %v720_v8 = vld [vmem:[%s1993_s6 + $0x18] sm:$0xff]  ;;  %v1514_v10 = vld [vmem:[%s1988_s1 + $0x20] sm:$0xff]  }
  0x37   :  { %1375 = vmatpush3.bf16.xpose.msra.mxu0 %v262_v57  ;;  %v1513_v9 = vld [vmem:[%s1988_s1 + $0x18] sm:$0xff]   ;;  %v721_v11 = vld [vmem:[%s1993_s6 + $0x20] sm:$0xff]  ;;  %v722_v12 = vld [vmem:[%s1993_s6 + $0x28] sm:$0xff] }
  0x38   :  { %1505 = vmatprep.subr.msk.bf16.mxu0 %vm218_vm0, %v65_v58  ;;  %v723_v13 = vld [vmem:[%s1993_s6 + $0x30] sm:$0xff]  ;;  %v724_v14 = vld [vmem:[%s1993_s6 + $0x38] sm:$0xff]  ;;  %v1515_v15 = vld [vmem:[%s1988_s1 + $0x28] sm:$0xff]  }
  0x39   :  { %488 = vperm.xlu0 %1508, %v430_v60   ;;  %493 = vperm.xlu1 %1509, %v431_v61   ;;  %v1516_v16 = vld [vmem:[%s1988_s1 + $0x30] sm:$0xff]   ;;  %v725_v17 = vld [vmem:[%s1993_s6 + $0x40] sm:$0xff]  ;;  %v726_v18 = vld [vmem:[%s1993_s6 + $0x48] sm:$0xff] }
  0x3a   :  { %v727_v19 = vld [vmem:[%s1993_s6 + $0x50] sm:$0xff]  ;;  %v728_v20 = vld [vmem:[%s1993_s6 + $0x58] sm:$0xff]  ;;  %v729_v22 = vld [vmem:[%s1993_s6 + $0x60] sm:$0xff] }
  0x3b   :  { %v1517_v21 = vld [vmem:[%s1988_s1 + $0x38] sm:$0xff]   ;;  %v730_v23 = vld [vmem:[%s1993_s6 + $0x68] sm:$0xff]  ;;  %v731_v24 = vld [vmem:[%s1993_s6 + $0x70] sm:$0xff] }
  0x3c   :  { %v732_v25 = vld [vmem:[%s1993_s6 + $0x78] sm:$0xff]  ;;  %v1006_v26 = vld [vmem:[%s1995_s8] sm:$0xff]  ;;  %v1007_v27 = vld [vmem:[%s1995_s8 + $0x8] sm:$0xff] }
  0x3d   :  { %498 = vperm.xlu0 %1508, %v432_v62   ;;  %503 = vperm.xlu1 %1509, %v433_v0   ;;  %v1008_v28 = vld [vmem:[%s1995_s8 + $0x10] sm:$0xff]  ;;  %v1009_v29 = vld [vmem:[%s1995_s8 + $0x18] sm:$0xff]  ;;  %v1010_v30 = vld [vmem:[%s1995_s8 + $0x20] sm:$0xff] }
  0x3e   :  { %v1011_v31 = vld [vmem:[%s1995_s8 + $0x28] sm:$0xff]  ;;  %v1012_v32 = vld [vmem:[%s1995_s8 + $0x30] sm:$0xff]  ;;  %v1013_v33 = vld [vmem:[%s1995_s8 + $0x38] sm:$0xff] }
  0x3f   :  { %1377 = vmatpush3.bf16.xpose.msra.mxu0 %v265_v63  ;;  %v1171_v34 = vld [vmem:[%s1996_s9] sm:$0xff]  ;;  %v1172_v35 = vld [vmem:[%s1996_s9 + $0x8] sm:$0xff]  ;;  %v1173_v36 = vld [vmem:[%s1996_s9 + $0x10] sm:$0xff] }
  0x40   :  { %v1174_v37 = vld [vmem:[%s1996_s9 + $0x18] sm:$0xff]  ;;  %v1175_v38 = vld [vmem:[%s1996_s9 + $0x20] sm:$0xff]  ;;  %v1176_v39 = vld [vmem:[%s1996_s9 + $0x28] sm:$0xff] }
  0x41   :  { %508 = vperm.xlu0 %1508, %v434_v1   ;;  %513 = vperm.xlu1 %1509, %v435_v2   ;;  %v1177_v40 = vld [vmem:[%s1996_s9 + $0x30] sm:$0xff]  ;;  %v1178_v41 = vld [vmem:[%s1996_s9 + $0x38] sm:$0xff]  ;;  %v1240_v42 = vld [vmem:[#allocation2] sm:$0x1] }
  0x42   :  { %v1518_v43 = vld [vmem:[%s1990_s3] sm:$0xff]  }
  0x43   :  { %1410 = vmatprep.mubr.bf16.mxu1 %v1518_v43 }
  0x45   :  { %735 = vperm.xlu0 %1508, %v717_v5   ;;  %740 = vperm.xlu1 %1509, %v718_v6  }
  0x46   :  { %1379 = vmatmul.mubr.msk.bf16.vlgmr.msra.gmra.mrb[0].mxu0 %vm218_vm0, %v1511_v3 }
  0x47   :  { %1382 = vmatprep.mubr.msk.bf16.mxu0 %vm218_vm0, %v1512_v4 }
  0x49   :  { %745 = vperm.xlu0 %1508, %v719_v7   ;;  %750 = vperm.xlu1 %1509, %v720_v8  }
  0x4d   :  { %755 = vperm.xlu0 %1508, %v721_v11   ;;  %760 = vperm.xlu1 %1509, %v722_v12  }
  0x4e   :  { %1383 = vmatmul.mubr.msk.bf16.gmra.mrb[4].mxu0 %vm218_vm0, %v1513_v9 }
  0x4f   :  { %1386 = vmatprep.mubr.msk.bf16.mxu0 %vm218_vm0, %v1514_v10 }
  0x51   :  { %765 = vperm.xlu0 %1508, %v723_v13   ;;  %770 = vperm.xlu1 %1509, %v724_v14  }
  0x55   :  { %775 = vperm.xlu0 %1508, %v725_v17   ;;  %780 = vperm.xlu1 %1509, %v726_v18  }
  0x56   :  { %1387 = vmatmul.mubr.msk.bf16.gmra.mrb[8].mxu0 %vm218_vm0, %v1515_v15 }
  0x57   :  { %1390 = vmatprep.mubr.msk.bf16.mxu0 %vm218_vm0, %v1516_v16 }
  0x59   :  { %785 = vperm.xlu0 %1508, %v727_v19   ;;  %790 = vperm.xlu1 %1509, %v728_v20  }
  0x5d   :  { %795 = vperm.xlu0 %1508, %v729_v22   ;;  %800 = vperm.xlu1 %1509, %v730_v23  }
  0x5e   :  { %1391 = vmatmul.mubr.msk.bf16.gmra.mrb[12].mxu0 %vm218_vm0, %v1517_v21 }
  0x61   :  { %805 = vperm.xlu0 %1508, %v731_v24   ;;  %810 = vperm.xlu1 %1509, %v732_v25  }
  0x65   :  { %1016 = vperm.xlu0 %1508, %v1006_v26   ;;  %1021 = vperm.xlu1 %1509, %v1007_v27  }
  0x69   :  { %1026 = vperm.xlu0 %1508, %v1008_v28   ;;  %1031 = vperm.xlu1 %1509, %v1009_v29  }
  0x6d   :  { %1036 = vperm.xlu0 %1508, %v1010_v30   ;;  %1041 = vperm.xlu1 %1509, %v1011_v31  }
  0x71   :  { %1046 = vperm.xlu0 %1508, %v1012_v32   ;;  %1051 = vperm.xlu1 %1509, %v1013_v33  }
  0x75   :  { %1181 = vperm.xlu0 %1508, %v1171_v34   ;;  %1186 = vperm.xlu1 %1509, %v1172_v35  }
  0x79   :  { %1191 = vperm.xlu0 %1508, %v1173_v36   ;;  %1196 = vperm.xlu1 %1509, %v1174_v37  }
  0x7d   :  { %1201 = vperm.xlu0 %1508, %v1175_v38   ;;  %1206 = vperm.xlu1 %1509, %v1176_v39  }
  0x81   :  { %1211 = vperm.xlu0 %1508, %v1177_v40   ;;  %1216 = vperm.xlu1 %1509, %v1178_v41  }
  0x84   :  { %v101_v44 = vpop.permute.xlu0 %100  ;;  %v111_v45 = vpop.permute.xlu1 %110 }
  0x85   :  { %1243 = vperm.xlu0 %1508, %v1240_v42  }
  0x88   :  { %v106_v46 = vpop.permute.xlu0 %105  ;;  %v116_v47 = vpop.permute.xlu1 %115 }
  0x8c   :  { %v121_v48 = vpop.permute.xlu0 %120  ;;  %v126_v49 = vpop.permute.xlu1 %125 }
  0x90   :  { %v131_v50 = vpop.permute.xlu0 %130  ;;  %v136_v54 = vpop.permute.xlu1 %135 }
  0x94   :  { %v141_v63 = vpop.permute.xlu0 %140  ;;  %v146_v3 = vpop.permute.xlu1 %145 }
  0x98   :  { %v151_v16 = vpop.permute.xlu0 %150  ;;  %v156_v20 = vpop.permute.xlu1 %155 }
  0x9c   :  { %v161_v30 = vpop.permute.xlu0 %160  ;;  %v166_v37 = vpop.permute.xlu1 %165 }
 0x119   :  { %v1380_v51 = vpop.f32.mrb[0].mxu0 }
 0x11a   :  { %v310_v52 = vadd.f32 %v1380_v51, %v111_v45  ;;  %v301_v53 = vpop.f32.mrb[1].mxu0  ;;  %v176_v51 = vpop.permute.xlu1 %175 }
 0x11b   :  { %v302_v55 = vadd.f32 %v301_v53, %v101_v44  ;;  %v1381_v56 = vpop.f32.mrb[2].mxu0  ;;  %v171_v44 = vpop.permute.xlu0 %170 }
 0x11c   :  { %v366_v57 = vmul.f32 0.01, %v310_v52  ;;  %v313_v58 = vadd.f32 %v1381_v56, %v116_v47  ;;  %v304_v59 = vpop.f32.mrb[3].mxu0 }
 0x11d   :  { %v364_v60 = vmul.f32 0.01, %v302_v55  ;;  %v305_v61 = vadd.f32 %v304_v59, %v106_v46 }
 0x11e   :  { %v367_v62 = vmul.f32 0.01, %v313_v58  ;;  %v382_v1 = vmax.f32 %v310_v52, %v366_v57 }
 0x11f   :  { %v365_v0 = vmul.f32 0.01, %v305_v61  ;;  %v380_v4 = vmax.f32 %v302_v55, %v364_v60 }
 0x120   :  { %v383_v2 = vmax.f32 %v313_v58, %v367_v62 }
 0x121   :  { %v381_v5 = vmax.f32 %v305_v61, %v365_v0  ;;  %v1384_v6 = vpop.f32.mrb[4].mxu0 }
 0x122   :  { %v326_v7 = vadd.f32 %v1384_v6, %v131_v50  ;;  %v317_v8 = vpop.f32.mrb[5].mxu0  ;;  %v397_v9 = vpack.c.bf16 %v383_v2, %v382_v1  ;;  %v1521_v6 = vld [vmem:[%s1990_s3 + $0x18] sm:$0xff]  }
 0x123   :  { %v318_v10 = vadd.f32 %v317_v8, %v121_v48  ;;  %v1385_v11 = vpop.f32.mrb[6].mxu0  ;;  %v396_v12 = vpack.c.bf16 %v381_v5, %v380_v4  ;;  %v1519_v4 = vld [vmem:[%s1990_s3 + $0x8] sm:$0xff]   ;;  %v1520_v5 = vld [vmem:[%s1990_s3 + $0x10] sm:$0xff]  }
 0x124   :  { %v370_v13 = vmul.f32 0.01, %v326_v7  ;;  %v329_v14 = vadd.f32 %v1385_v11, %v136_v54  ;;  %v320_v15 = vpop.f32.mrb[7].mxu0  ;;  %v1523_v8 = vld [vmem:[%s1990_s3 + $0x28] sm:$0xff]   ;;  %v1526_v11 = vld [vmem:[%s1992_s5] sm:$0xff]  }
 0x125   :  { %v368_v17 = vmul.f32 0.01, %v318_v10  ;;  %v321_v18 = vadd.f32 %v320_v15, %v126_v49  ;;  %1394 = vmatprep.subr.bf16.mxu1 %v396_v12 }
 0x126   :  { %v371_v19 = vmul.f32 0.01, %v329_v14  ;;  %1395 = vmatpush3.bf16.msra.mxu1 %v396_v12  ;;  %v386_v22 = vmax.f32 %v326_v7, %v370_v13  ;;  %v1522_v7 = vld [vmem:[%s1990_s3 + $0x20] sm:$0xff]   ;;  %v439_v12 = vpop.permute.xlu0 %438  ;;  %v444_v13 = vpop.permute.xlu1 %443 }
 0x127   :  { %v369_v21 = vmul.f32 0.01, %v321_v18  ;;  %1396 = vmatprep.subr.bf16.mxu1 %v397_v9  ;;  %v384_v24 = vmax.f32 %v318_v10, %v368_v17  ;;  %v1525_v10 = vld [vmem:[%s1990_s3 + $0x38] sm:$0xff]  }
 0x128   :  { %v387_v23 = vmax.f32 %v329_v14, %v371_v19 }
 0x129   :  { %v385_v25 = vmax.f32 %v321_v18, %v369_v21  ;;  %v1388_v26 = vpop.f32.mrb[8].mxu0 }
 0x12a   :  { %v342_v27 = vadd.f32 %v1388_v26, %v151_v16  ;;  %v333_v28 = vpop.f32.mrb[9].mxu0  ;;  %1397 = vmatpush3.bf16.msra.mxu1 %v397_v9  ;;  %v399_v29 = vpack.c.bf16 %v387_v23, %v386_v22  ;;  %v1524_v9 = vld [vmem:[%s1990_s3 + $0x30] sm:$0xff]   ;;  %v449_v14 = vpop.permute.xlu0 %448 }
 0x12b   :  { %v334_v31 = vadd.f32 %v333_v28, %v141_v63  ;;  %v1389_v32 = vpop.f32.mrb[10].mxu0  ;;  %v398_v33 = vpack.c.bf16 %v385_v25, %v384_v24  ;;  %v454_v15 = vpop.permute.xlu1 %453 }
 0x12c   :  { %v374_v34 = vmul.f32 0.01, %v342_v27  ;;  %v345_v35 = vadd.f32 %v1389_v32, %v156_v20  ;;  %v336_v36 = vpop.f32.mrb[11].mxu0 }
 0x12d   :  { %v372_v38 = vmul.f32 0.01, %v334_v31  ;;  %v337_v39 = vadd.f32 %v336_v36, %v146_v3  ;;  %1398 = vmatprep.subr.bf16.mxu1 %v398_v33 }
 0x12e   :  { %v375_v40 = vmul.f32 0.01, %v345_v35  ;;  %1399 = vmatpush3.bf16.msra.mxu1 %v398_v33  ;;  %v390_v42 = vmax.f32 %v342_v27, %v374_v34  ;;  %v459_v16 = vpop.permute.xlu0 %458 }
 0x12f   :  { %v373_v41 = vmul.f32 0.01, %v337_v39  ;;  %1400 = vmatprep.subr.bf16.mxu1 %v399_v29  ;;  %v388_v45 = vmax.f32 %v334_v31, %v372_v38  ;;  %v464_v17 = vpop.permute.xlu1 %463 }
 0x130   :  { %v391_v43 = vmax.f32 %v345_v35, %v375_v40 }
 0x131   :  { %v389_v46 = vmax.f32 %v337_v39, %v373_v41  ;;  %v1392_v47 = vpop.f32.mrb[12].mxu0 }
 0x132   :  { %v358_v48 = vadd.f32 %v1392_v47, %v171_v44  ;;  %v349_v49 = vpop.f32.mrb[13].mxu0  ;;  %1401 = vmatpush3.bf16.msra.mxu1 %v399_v29  ;;  %v401_v50 = vpack.c.bf16 %v391_v43, %v390_v42  ;;  %v469_v18 = vpop.permute.xlu0 %468 }
 0x133   :  { %v350_v52 = vadd.f32 %v349_v49, %v161_v30  ;;  %v1393_v53 = vpop.f32.mrb[14].mxu0  ;;  %v400_v54 = vpack.c.bf16 %v389_v46, %v388_v45  ;;  %v474_v22 = vpop.permute.xlu1 %473 }
 0x134   :  { %v378_v55 = vmul.f32 0.01, %v358_v48  ;;  %v361_v56 = vadd.f32 %v1393_v53, %v176_v51  ;;  %v352_v57 = vpop.f32.mrb[15].mxu0 }
 0x135   :  { %v376_v58 = vmul.f32 0.01, %v350_v52  ;;  %v353_v59 = vadd.f32 %v352_v57, %v166_v37  ;;  %1402 = vmatprep.subr.bf16.mxu1 %v400_v54 }
 0x136   :  { %v379_v60 = vmul.f32 0.01, %v361_v56  ;;  %1403 = vmatpush3.bf16.msra.mxu1 %v400_v54  ;;  %v394_v62 = vmax.f32 %v358_v48, %v378_v55  ;;  %v479_v31 = vpop.permute.xlu0 %478 }
 0x137   :  { %v377_v61 = vmul.f32 0.01, %v353_v59  ;;  %1404 = vmatprep.subr.bf16.mxu1 %v401_v50  ;;  %v392_v0 = vmax.f32 %v350_v52, %v376_v58  ;;  %v484_v35 = vpop.permute.xlu1 %483 }
 0x138   :  { %v395_v63 = vmax.f32 %v361_v56, %v379_v60 }
 0x139   :  { %v393_v1 = vmax.f32 %v353_v59, %v377_v61 }
 0x13a   :  { %1405 = vmatpush3.bf16.msra.mxu1 %v401_v50  ;;  %v403_v2 = vpack.c.bf16 %v395_v63, %v394_v62  ;;  %v489_v48 = vpop.permute.xlu0 %488 }
 0x13b   :  { %v402_v3 = vpack.c.bf16 %v393_v1, %v392_v0  ;;  %v494_v52 = vpop.permute.xlu1 %493 }
 0x13d   :  { %1406 = vmatprep.subr.bf16.mxu1 %v402_v3 }
 0x13e   :  { %1407 = vmatpush3.bf16.msra.mxu1 %v402_v3  ;;  %v499_v62 = vpop.permute.xlu0 %498 }
 0x13f   :  { %1408 = vmatprep.subr.bf16.mxu1 %v403_v2 }
 0x142   :  { %1409 = vmatpush3.bf16.msra.mxu1 %v403_v2 }
 0x145   :  { %1411 = vmatmul.mubr.bf16.vlgmr.msra.gmra.mrb[0].mxu1 %v1519_v4 }
 0x146   :  { %1414 = vmatprep.mubr.bf16.mxu1 %v1520_v5  ;;  %v504_v5 = vpop.permute.xlu1 %503 }
 0x14d   :  { %1415 = vmatmul.mubr.bf16.gmra.mrb[4].mxu1 %v1521_v6 }
 0x14e   :  { %1418 = vmatprep.mubr.bf16.mxu1 %v1522_v7 }
 0x155   :  { %1419 = vmatmul.mubr.bf16.gmra.mrb[8].mxu1 %v1523_v8 }
 0x156   :  { %1422 = vmatprep.mubr.bf16.mxu1 %v1524_v9 }
 0x15d   :  { %1423 = vmatmul.mubr.bf16.gmra.mrb[12].mxu1 %v1525_v10 }
 0x15e   :  { %1442 = vmatprep.mubr.bf16.mxu1 %v1526_v11 }
 0x218   :  { %v1412_v19 = vpop.f32.mrb[0].mxu1 }
 0x219   :  { %v607_v20 = vadd.f32 %v1412_v19, %v449_v14  ;;  %v598_v21 = vpop.f32.mrb[1].mxu1  ;;  %v514_v19 = vpop.permute.xlu1 %513 }
 0x21a   :  { %v599_v23 = vadd.f32 %v598_v21, %v439_v12  ;;  %v1413_v24 = vpop.f32.mrb[2].mxu1  ;;  %v509_v12 = vpop.permute.xlu0 %508 }
 0x21b   :  { %v663_v25 = vmul.f32 0.01, %v607_v20  ;;  %v610_v26 = vadd.f32 %v1413_v24, %v454_v15  ;;  %v601_v27 = vpop.f32.mrb[3].mxu1 }
 0x21c   :  { %v661_v28 = vmul.f32 0.01, %v599_v23  ;;  %v602_v29 = vadd.f32 %v601_v27, %v444_v13 }
 0x21d   :  { %v664_v30 = vmul.f32 0.01, %v610_v26  ;;  %v679_v33 = vmax.f32 %v607_v20, %v663_v25 }
 0x21e   :  { %v662_v32 = vmul.f32 0.01, %v602_v29  ;;  %v677_v36 = vmax.f32 %v599_v23, %v661_v28 }
 0x21f   :  { %v680_v34 = vmax.f32 %v610_v26, %v664_v30 }
 0x220   :  { %v678_v37 = vmax.f32 %v602_v29, %v662_v32  ;;  %v1416_v38 = vpop.f32.mrb[4].mxu1 }
 0x221   :  { %v623_v39 = vadd.f32 %v1416_v38, %v469_v18  ;;  %v614_v40 = vpop.f32.mrb[5].mxu1  ;;  %v694_v41 = vpack.c.bf16 %v680_v34, %v679_v33  ;;  %v1529_v38 = vld [vmem:[%s1992_s5 + $0x18] sm:$0xff]  }
 0x222   :  { %v615_v42 = vadd.f32 %v614_v40, %v459_v16  ;;  %v1417_v43 = vpop.f32.mrb[6].mxu1  ;;  %v693_v44 = vpack.c.bf16 %v678_v37, %v677_v36  ;;  %v1527_v36 = vld [vmem:[%s1992_s5 + $0x8] sm:$0xff]   ;;  %v1528_v37 = vld [vmem:[%s1992_s5 + $0x10] sm:$0xff]  }
 0x223   :  { %v667_v45 = vmul.f32 0.01, %v623_v39  ;;  %v626_v46 = vadd.f32 %v1417_v43, %v474_v22  ;;  %v617_v47 = vpop.f32.mrb[7].mxu1  ;;  %v1531_v40 = vld [vmem:[%s1992_s5 + $0x28] sm:$0xff]   ;;  %v1534_v43 = vld [vmem:[%s1994_s7] sm:$0xff]  }
 0x224   :  { %v665_v49 = vmul.f32 0.01, %v615_v42  ;;  %v618_v50 = vadd.f32 %v617_v47, %v464_v17  ;;  %1426 = vmatprep.subr.bf16.mxu1 %v693_v44  ;;  %1474 = vmatprep.mubr.bf16.mxu0 %v1534_v43 }
 0x225   :  { %v668_v51 = vmul.f32 0.01, %v626_v46  ;;  %1427 = vmatpush3.bf16.msra.mxu1 %v693_v44  ;;  %v683_v54 = vmax.f32 %v623_v39, %v667_v45  ;;  %v1530_v39 = vld [vmem:[%s1992_s5 + $0x20] sm:$0xff]   ;;  %v1535_v44 = vld [vmem:[%s1994_s7 + $0x10] sm:$0xff]   ;;  %v736_v45 = vpop.permute.xlu0 %735 }
 0x226   :  { %v666_v53 = vmul.f32 0.01, %v618_v50  ;;  %1428 = vmatprep.subr.bf16.mxu1 %v694_v41  ;;  %v681_v56 = vmax.f32 %v615_v42, %v665_v49  ;;  %v1533_v42 = vld [vmem:[%s1992_s5 + $0x38] sm:$0xff]  }
 0x227   :  { %v684_v55 = vmax.f32 %v626_v46, %v668_v51  ;;  %v741_v46 = vpop.permute.xlu1 %740 }
 0x228   :  { %v682_v57 = vmax.f32 %v618_v50, %v666_v53  ;;  %v1420_v58 = vpop.f32.mrb[8].mxu1 }
 0x229   :  { %v639_v59 = vadd.f32 %v1420_v58, %v489_v48  ;;  %v630_v60 = vpop.f32.mrb[9].mxu1  ;;  %1429 = vmatpush3.bf16.msra.mxu1 %v694_v41  ;;  %v696_v61 = vpack.c.bf16 %v684_v55, %v683_v54  ;;  %v1532_v41 = vld [vmem:[%s1992_s5 + $0x30] sm:$0xff]   ;;  %v746_v47 = vpop.permute.xlu0 %745 }
 0x22a   :  { %v631_v63 = vadd.f32 %v630_v60, %v479_v31  ;;  %v1421_v0 = vpop.f32.mrb[10].mxu1  ;;  %v695_v1 = vpack.c.bf16 %v682_v57, %v681_v56 }
 0x22b   :  { %v671_v2 = vmul.f32 0.01, %v639_v59  ;;  %v642_v3 = vadd.f32 %v1421_v0, %v494_v52  ;;  %v633_v4 = vpop.f32.mrb[11].mxu1  ;;  %v751_v48 = vpop.permute.xlu1 %750 }
 0x22c   :  { %v669_v6 = vmul.f32 0.01, %v631_v63  ;;  %v634_v7 = vadd.f32 %v633_v4, %v484_v35  ;;  %1430 = vmatprep.subr.bf16.mxu1 %v695_v1 }
 0x22d   :  { %v672_v8 = vmul.f32 0.01, %v642_v3  ;;  %1431 = vmatpush3.bf16.msra.mxu1 %v695_v1  ;;  %v687_v10 = vmax.f32 %v639_v59, %v671_v2  ;;  %v756_v49 = vpop.permute.xlu0 %755 }
 0x22e   :  { %v670_v9 = vmul.f32 0.01, %v634_v7  ;;  %1432 = vmatprep.subr.bf16.mxu1 %v696_v61  ;;  %v685_v13 = vmax.f32 %v631_v63, %v669_v6 }
 0x22f   :  { %v688_v11 = vmax.f32 %v642_v3, %v672_v8  ;;  %v761_v50 = vpop.permute.xlu1 %760 }
 0x230   :  { %v686_v14 = vmax.f32 %v634_v7, %v670_v9  ;;  %v1424_v15 = vpop.f32.mrb[12].mxu1 }
 0x231   :  { %v655_v16 = vadd.f32 %v1424_v15, %v509_v12  ;;  %v646_v17 = vpop.f32.mrb[13].mxu1  ;;  %1433 = vmatpush3.bf16.msra.mxu1 %v696_v61  ;;  %v698_v18 = vpack.c.bf16 %v688_v11, %v687_v10  ;;  %v766_v51 = vpop.permute.xlu0 %765 }
 0x232   :  { %v647_v20 = vadd.f32 %v646_v17, %v499_v62  ;;  %v1425_v21 = vpop.f32.mrb[14].mxu1  ;;  %v697_v22 = vpack.c.bf16 %v686_v14, %v685_v13 }
 0x233   :  { %v675_v23 = vmul.f32 0.01, %v655_v16  ;;  %v658_v24 = vadd.f32 %v1425_v21, %v514_v19  ;;  %v649_v25 = vpop.f32.mrb[15].mxu1  ;;  %v771_v55 = vpop.permute.xlu1 %770 }
 0x234   :  { %v673_v26 = vmul.f32 0.01, %v647_v20  ;;  %v650_v27 = vadd.f32 %v649_v25, %v504_v5  ;;  %1434 = vmatprep.subr.bf16.mxu1 %v697_v22 }
 0x235   :  { %v676_v28 = vmul.f32 0.01, %v658_v24  ;;  %1435 = vmatpush3.bf16.msra.mxu1 %v697_v22  ;;  %v691_v30 = vmax.f32 %v655_v16, %v675_v23  ;;  %v776_v0 = vpop.permute.xlu0 %775 }
 0x236   :  { %v674_v29 = vmul.f32 0.01, %v650_v27  ;;  %1436 = vmatprep.subr.bf16.mxu1 %v698_v18  ;;  %v689_v32 = vmax.f32 %v647_v20, %v673_v26 }
 0x237   :  { %v692_v31 = vmax.f32 %v658_v24, %v676_v28  ;;  %v781_v4 = vpop.permute.xlu1 %780 }
 0x238   :  { %v690_v33 = vmax.f32 %v650_v27, %v674_v29 }
 0x239   :  { %1437 = vmatpush3.bf16.msra.mxu1 %v698_v18  ;;  %v700_v34 = vpack.c.bf16 %v692_v31, %v691_v30  ;;  %v786_v17 = vpop.permute.xlu0 %785 }
 0x23a   :  { %v699_v35 = vpack.c.bf16 %v690_v33, %v689_v32 }
 0x23b   :  { %v791_v21 = vpop.permute.xlu1 %790 }
 0x23c   :  { %1438 = vmatprep.subr.bf16.mxu1 %v699_v35 }
 0x23d   :  { %1439 = vmatpush3.bf16.msra.mxu1 %v699_v35  ;;  %v796_v31 = vpop.permute.xlu0 %795 }
 0x23e   :  { %1440 = vmatprep.subr.bf16.mxu1 %v700_v34 }
 0x241   :  { %1441 = vmatpush3.bf16.msra.mxu1 %v700_v34 }
 0x244   :  { %1443 = vmatmul.mubr.bf16.vlgmr.msra.gmra.mrb[16].mxu1 %v1527_v36 }
 0x245   :  { %1446 = vmatprep.mubr.bf16.mxu1 %v1528_v37 }
 0x24c   :  { %1447 = vmatmul.mubr.bf16.gmra.mrb[20].mxu1 %v1529_v38  ;;  %v801_v38 = vpop.permute.xlu1 %800 }
 0x24d   :  { %1450 = vmatprep.mubr.bf16.mxu1 %v1530_v39 }
 0x254   :  { %1451 = vmatmul.mubr.bf16.gmra.mrb[24].mxu1 %v1531_v40 }
 0x255   :  { %1454 = vmatprep.mubr.bf16.mxu1 %v1532_v41 }
 0x25c   :  { %1455 = vmatmul.mubr.bf16.gmra.mrb[28].mxu1 %v1533_v42 }
 0x25d   :  { %1478 = vmatprep.mubr.bf16.mxu1 %v1535_v44 }
 0x317   :  { %v1444_v52 = vpop.f32.mrb[16].mxu1 }
 0x318   :  { %v904_v53 = vadd.f32 %v1444_v52, %v746_v47  ;;  %v895_v54 = vpop.f32.mrb[17].mxu1  ;;  %v811_v52 = vpop.permute.xlu1 %810 }
 0x319   :  { %v896_v56 = vadd.f32 %v895_v54, %v736_v45  ;;  %v1445_v57 = vpop.f32.mrb[18].mxu1  ;;  %v806_v45 = vpop.permute.xlu0 %805 }
 0x31a   :  { %v960_v58 = vmul.f32 0.01, %v904_v53  ;;  %v907_v59 = vadd.f32 %v1445_v57, %v751_v48  ;;  %v898_v60 = vpop.f32.mrb[19].mxu1 }
 0x31b   :  { %v958_v61 = vmul.f32 0.01, %v896_v56  ;;  %v899_v62 = vadd.f32 %v898_v60, %v741_v46 }
 0x31c   :  { %v961_v63 = vmul.f32 0.01, %v907_v59  ;;  %v976_v2 = vmax.f32 %v904_v53, %v960_v58 }
 0x31d   :  { %v959_v1 = vmul.f32 0.01, %v899_v62  ;;  %v974_v5 = vmax.f32 %v896_v56, %v958_v61 }
 0x31e   :  { %v977_v3 = vmax.f32 %v907_v59, %v961_v63 }
 0x31f   :  { %v975_v6 = vmax.f32 %v899_v62, %v959_v1  ;;  %v1448_v7 = vpop.f32.mrb[20].mxu1 }
 0x320   :  { %v991_v8 = vpack.c.bf16 %v977_v3, %v976_v2  ;;  %v920_v9 = vadd.f32 %v1448_v7, %v766_v51  ;;  %v911_v10 = vpop.f32.mrb[21].mxu1  ;;  %v1017_v7 = vpop.permute.xlu0 %1016 }
 0x321   :  { %v990_v11 = vpack.c.bf16 %v975_v6, %v974_v5  ;;  %v912_v12 = vadd.f32 %v911_v10, %v756_v49  ;;  %v1449_v13 = vpop.f32.mrb[22].mxu1  ;;  %v1536_v5 = vld [vmem:[%s1994_s7 + $0x8] sm:$0xff]   ;;  %v1537_v6 = vld [vmem:[%s1994_s7 + $0x18] sm:$0xff]   ;;  %s1563_s7 = smov [#allocation3]  }
 0x322   :  { %v964_v14 = vmul.f32 0.01, %v920_v9  ;;  %v923_v15 = vadd.f32 %v1449_v13, %v771_v55  ;;  %v914_v16 = vpop.f32.mrb[23].mxu1  ;;  %s1258_s25 = sshll.u32 %s1563_s7, 4  ;;  %s1259_s25 = int_to_ptr.vmem [resolvable:$true] %s1258_s25 }
 0x323   :  { %v962_v18 = vmul.f32 0.01, %v912_v12  ;;  %v915_v19 = vadd.f32 %v914_v16, %v761_v50  ;;  %1458 = vmatprep.subr.bf16.mxu0 %v990_v11  ;;  %1482 = vmatprep.subr.bf16.mxu1 %v990_v11  ;;  %s1538_s26 = scalar_lea.vmem %s1259_s25, 16  ;;  %s1542_s10 = scalar_lea.vmem %s1259_s25, 32 }
 0x324   :  { %v965_v20 = vmul.f32 0.01, %v923_v15  ;;  %1459 = vmatpush3.bf16.msra.mxu0 %v990_v11  ;;  %1490 = vmatpush3.bf16.msra.mxu1 %v990_v11  ;;  %v980_v23 = vmax.f32 %v920_v9, %v964_v14  ;;  %v1027_v9 = vpop.permute.xlu0 %1026  ;;  %p1539_p0 = scmp.ne.s32.totalorder %s1259_s25, %s1538_s26  ;;  %p1543_p1 = scmp.lt.s32.totalorder %s1259_s25, %s1259_s25 }
 0x325   :  { %v963_v22 = vmul.f32 0.01, %v915_v19  ;;  %1460 = vmatprep.subr.bf16.mxu0 %v991_v8  ;;  %1483 = vmatprep.subr.bf16.mxu1 %v991_v8  ;;  %v978_v25 = vmax.f32 %v912_v12, %v962_v18  ;;  %p1544_p2 = scmp.lt.s32.totalorder %s1542_s10, %s1538_s26 }
 0x326   :  { %v981_v24 = vmax.f32 %v923_v15, %v965_v20 }
 0x327   :  { %v979_v26 = vmax.f32 %v915_v19, %v963_v22  ;;  %v1452_v27 = vpop.f32.mrb[24].mxu1  ;;  %p1545_p3 = por %p1544_p2, %p1543_p1 }
 0x328   :  { %v993_v28 = vpack.c.bf16 %v981_v24, %v980_v23  ;;  %v936_v29 = vadd.f32 %v1452_v27, %v786_v17  ;;  %v927_v30 = vpop.f32.mrb[25].mxu1  ;;  %1461 = vmatpush3.bf16.msra.mxu0 %v991_v8  ;;  %1491 = vmatpush3.bf16.msra.mxu1 %v991_v8  ;;  %v1022_v8 = vpop.permute.xlu1 %1021 }
 0x329   :  { %v992_v32 = vpack.c.bf16 %v979_v26, %v978_v25  ;;  %v928_v33 = vadd.f32 %v927_v30, %v776_v0  ;;  %v1453_v34 = vpop.f32.mrb[26].mxu1  ;;  %v1037_v11 = vpop.permute.xlu0 %1036  ;;  %p1546_p4 = pnand %p1545_p3, %p1539_p0 }
 0x32a   :  { %v968_v35 = vmul.f32 0.01, %v936_v29  ;;  %v939_v36 = vadd.f32 %v1453_v34, %v791_v21  ;;  %v930_v37 = vpop.f32.mrb[27].mxu1 }
 0x32b   :  { %v966_v39 = vmul.f32 0.01, %v928_v33  ;;  %v931_v40 = vadd.f32 %v930_v37, %v781_v4  ;;  %1462 = vmatprep.subr.bf16.mxu0 %v992_v32  ;;  %1484 = vmatprep.subr.bf16.mxu1 %v992_v32 }
 0x32c   :  { %v969_v41 = vmul.f32 0.01, %v939_v36  ;;  %1463 = vmatpush3.bf16.msra.mxu0 %v992_v32  ;;  %1492 = vmatpush3.bf16.msra.mxu1 %v992_v32  ;;  %v984_v43 = vmax.f32 %v936_v29, %v968_v35  ;;  %v1032_v10 = vpop.permute.xlu1 %1031 }
 0x32d   :  { %v967_v42 = vmul.f32 0.01, %v931_v40  ;;  %1464 = vmatprep.subr.bf16.mxu0 %v993_v28  ;;  %1485 = vmatprep.subr.bf16.mxu1 %v993_v28  ;;  %v982_v46 = vmax.f32 %v928_v33, %v966_v39  ;;  %v1047_v13 = vpop.permute.xlu0 %1046 }
 0x32e   :  { %v985_v44 = vmax.f32 %v939_v36, %v969_v41 }
 0x32f   :  { %v983_v47 = vmax.f32 %v931_v40, %v967_v42  ;;  %v1456_v48 = vpop.f32.mrb[28].mxu1 }
 0x330   :  { %v995_v49 = vpack.c.bf16 %v985_v44, %v984_v43  ;;  %v952_v50 = vadd.f32 %v1456_v48, %v806_v45  ;;  %v943_v51 = vpop.f32.mrb[29].mxu1  ;;  %1465 = vmatpush3.bf16.msra.mxu0 %v993_v28  ;;  %1493 = vmatpush3.bf16.msra.mxu1 %v993_v28  ;;  %v1042_v12 = vpop.permute.xlu1 %1041 }
 0x331   :  { %v994_v53 = vpack.c.bf16 %v983_v47, %v982_v46  ;;  %v944_v54 = vadd.f32 %v943_v51, %v796_v31  ;;  %v1457_v55 = vpop.f32.mrb[30].mxu1  ;;  %v1182_v35 = vpop.permute.xlu0 %1181 }
 0x332   :  { %v972_v56 = vmul.f32 0.01, %v952_v50  ;;  %v955_v57 = vadd.f32 %v1457_v55, %v811_v52  ;;  %v946_v58 = vpop.f32.mrb[31].mxu1 }
 0x333   :  { %v970_v59 = vmul.f32 0.01, %v944_v54  ;;  %v947_v60 = vadd.f32 %v946_v58, %v801_v38  ;;  %1466 = vmatprep.subr.bf16.mxu0 %v994_v53  ;;  %1486 = vmatprep.subr.bf16.mxu1 %v994_v53 }
 0x334   :  { %v973_v61 = vmul.f32 0.01, %v955_v57  ;;  %1467 = vmatpush3.bf16.msra.mxu0 %v994_v53  ;;  %1494 = vmatpush3.bf16.msra.mxu1 %v994_v53  ;;  %v988_v63 = vmax.f32 %v952_v50, %v972_v56  ;;  %v1052_v14 = vpop.permute.xlu1 %1051 }
 0x335   :  { %v971_v62 = vmul.f32 0.01, %v947_v60  ;;  %1468 = vmatprep.subr.bf16.mxu0 %v995_v49  ;;  %1487 = vmatprep.subr.bf16.mxu1 %v995_v49  ;;  %v986_v1 = vmax.f32 %v944_v54, %v970_v59  ;;  %v1192_v53 = vpop.permute.xlu0 %1191 }
 0x336   :  { %v989_v0 = vmax.f32 %v955_v57, %v973_v61 }
 0x337   :  { %v987_v2 = vmax.f32 %v947_v60, %v971_v62 }
 0x338   :  { %v997_v3 = vpack.c.bf16 %v989_v0, %v988_v63  ;;  %1469 = vmatpush3.bf16.msra.mxu0 %v995_v49  ;;  %1495 = vmatpush3.bf16.msra.mxu1 %v995_v49  ;;  %v1187_v40 = vpop.permute.xlu1 %1186 }
 0x339   :  { %v996_v4 = vpack.c.bf16 %v987_v2, %v986_v1  ;;  %v1202_v0 = vpop.permute.xlu0 %1201 }
 0x33b   :  { %1470 = vmatprep.subr.bf16.mxu0 %v996_v4  ;;  %1488 = vmatprep.subr.bf16.mxu1 %v996_v4 }
 0x33c   :  { %1471 = vmatpush3.bf16.msra.mxu0 %v996_v4  ;;  %1496 = vmatpush3.bf16.msra.mxu1 %v996_v4  ;;  %v1197_v57 = vpop.permute.xlu1 %1196 }
 0x33d   :  { %1472 = vmatprep.subr.bf16.mxu0 %v997_v3  ;;  %1489 = vmatprep.subr.bf16.mxu1 %v997_v3 }
 0x340   :  { %1473 = vmatpush3.bf16.msra.mxu0 %v997_v3  ;;  %1497 = vmatpush3.bf16.msra.mxu1 %v997_v3  ;;  %v1207_v4 = vpop.permute.xlu1 %1206 }
 0x343   :  { %1475 = vmatmul.mubr.bf16.vlgmr.msra.gmra.mrb[16].mxu0 %v1536_v5  ;;  %1479 = vmatmul.mubr.bf16.vlgmr.msra.gmra.mrb[32].mxu1 %v1537_v6 }
 0x416   :  { %v1476_v15 = vpop.f32.mrb[16].mxu0  ;;  %v1480_v16 = vpop.f32.mrb[32].mxu1 }
 0x417   :  { %v1121_v17 = vadd.f32 %v1476_v15, %v1027_v9  ;;  %v1137_v18 = vadd.f32 %v1480_v16, %v1047_v13  ;;  %v1112_v19 = vpop.f32.mrb[17].mxu0  ;;  %v1128_v20 = vpop.f32.mrb[33].mxu1 }
 0x418   :  { %v1113_v21 = vadd.f32 %v1112_v19, %v1017_v7  ;;  %v1129_v22 = vadd.f32 %v1128_v20, %v1037_v11  ;;  %v1477_v23 = vpop.f32.mrb[18].mxu0  ;;  %v1481_v24 = vpop.f32.mrb[34].mxu1 }
 0x419   :  { %v1145_v25 = vmul.f32 0.01, %v1121_v17  ;;  %v1149_v26 = vmul.f32 0.01, %v1137_v18  ;;  %v1124_v27 = vadd.f32 %v1477_v23, %v1032_v10  ;;  %v1140_v28 = vadd.f32 %v1481_v24, %v1052_v14  ;;  %v1115_v29 = vpop.f32.mrb[19].mxu0  ;;  %v1131_v30 = vpop.f32.mrb[35].mxu1 }
 0x41a   :  { %v1143_v31 = vmul.f32 0.01, %v1113_v21  ;;  %v1147_v32 = vmul.f32 0.01, %v1129_v22  ;;  %v1116_v33 = vadd.f32 %v1115_v29, %v1022_v8  ;;  %v1132_v34 = vadd.f32 %v1131_v30, %v1042_v12  ;;  %v1212_v11 = vpop.permute.xlu0 %1211  ;;  %v1217_v14 = vpop.permute.xlu1 %1216 }
 0x41b   :  { %v1146_v36 = vmul.f32 0.01, %v1124_v27  ;;  %v1150_v37 = vmul.f32 0.01, %v1140_v28  ;;  %v1153_v41 = vmax.f32 %v1121_v17, %v1145_v25  ;;  %v1157_v42 = vmax.f32 %v1137_v18, %v1149_v26 }
 0x41c   :  { %v1144_v38 = vmul.f32 0.01, %v1116_v33  ;;  %v1148_v39 = vmul.f32 0.01, %v1132_v34  ;;  %v1151_v45 = vmax.f32 %v1113_v21, %v1143_v31  ;;  %v1155_v46 = vmax.f32 %v1129_v22, %v1147_v32 }
 0x41d   :  { %v1154_v43 = vmax.f32 %v1124_v27, %v1146_v36  ;;  %v1158_v44 = vmax.f32 %v1140_v28, %v1150_v37  ;;  %v1246_v17 = vlaneseq }
 0x41e   :  { %v1152_v47 = vmax.f32 %v1116_v33, %v1144_v38  ;;  %v1156_v48 = vmax.f32 %v1132_v34, %v1148_v39  ;;  %v1244_v25 = vpop.permute.xlu0 %1243 }
 0x41f   :  { %v1160_v49 = vpack.c.bf16 %v1154_v43, %v1153_v41  ;;  %v1162_v50 = vpack.c.bf16 %v1158_v44, %v1157_v42  ;;  %v1247_v20 = vshrl.u32 %v1246_v17, 7 }
 0x420   :  { %v1159_v51 = vpack.c.bf16 %v1152_v47, %v1151_v45  ;;  %v1161_v52 = vpack.c.bf16 %v1156_v48, %v1155_v46 }
 0x421   :  { %v1165_v54 = vunpack.c.l.bf16 %v1160_v49  ;;  %v1166_v58 = vunpack.c.h.bf16 %v1160_v49  ;;  %v1169_v5 = vunpack.c.l.bf16 %v1162_v50  ;;  %v1170_v8 = vunpack.c.h.bf16 %v1162_v50 }
 0x422   :  { %v1163_v55 = vunpack.c.l.bf16 %v1159_v51  ;;  %v1164_v56 = vunpack.c.h.bf16 %v1159_v51  ;;  %v1167_v63 = vunpack.c.l.bf16 %v1161_v52  ;;  %v1168_v3 = vunpack.c.h.bf16 %v1161_v52 }
 0x423   :  { %v1221_v61 = vmul.f32 %v1192_v53, %v1165_v54  ;;  %v1222_v1 = vmul.f32 %v1197_v57, %v1166_v58  ;;  %v1225_v12 = vmul.f32 %v1212_v11, %v1169_v5  ;;  %v1226_v15 = vmul.f32 %v1217_v14, %v1170_v8 }
 0x424   :  { %v1219_v59 = vmul.f32 %v1182_v35, %v1163_v55  ;;  %v1220_v60 = vmul.f32 %v1187_v40, %v1164_v56  ;;  %v1223_v6 = vmul.f32 %v1202_v0, %v1167_v63  ;;  %v1224_v9 = vmul.f32 %v1207_v4, %v1168_v3 }
 0x425   :  { %v1248_v23 = vsub.s32 0, %v1247_v20 }
 0x426   :  { %v1227_v62 = vadd.f32 %v1220_v60, %v1219_v59 }
 0x427   :  { %v1249_v27 = vrot.slane %v1244_v25, %v1248_v23 }
 0x428   :  { %v1228_v2 = vadd.f32 %v1227_v62, %v1221_v61 }
 0x42a   :  { %v1229_v7 = vadd.f32 %v1228_v2, %v1222_v1 }
 0x42c   :  { %v1230_v10 = vadd.f32 %v1229_v7, %v1223_v6 }
 0x42e   :  { %v1231_v13 = vadd.f32 %v1230_v10, %v1224_v9 }
 0x430   :  { %v1232_v16 = vadd.f32 %v1231_v13, %v1225_v12 }
 0x432   :  { %v1233_v18 = vadd.f32 %v1232_v16, %v1226_v15 }
 0x434   :  { %v1234_v19 = vrot.slane %v1233_v18, 4 }
 0x436   :  { %v1235_v21 = vadd.f32 %v1234_v19, %v1233_v18 }
 0x438   :  { %v1236_v22 = vrot.slane %v1235_v21, 2 }
 0x43a   :  { %v1237_v24 = vadd.f32 %v1236_v22, %v1235_v21 }
 0x43c   :  { %v1238_v26 = vrot.slane %v1237_v24, 1 }
 0x43e   :  { %v1239_v28 = vadd.f32 %v1238_v26, %v1237_v24 }
 0x440   :  { %v1250_v29 = vadd.f32 %v1249_v27, %v1239_v28 }
 0x442   :  { %1251 = vst [vmem:[#allocation3] sm:$0x1] %v1250_v29 }
 0x443   :  { %1549 = shalt.err (!%p1546_p4)
}
 0x444   :  { %s1550_s29 = scalar_lea.hbm %s1998_s11, 16 }
 0x445   :  { %p1551_p5 = scmp.ne.s32.totalorder %s1998_s11, %s1550_s29  ;;  %p1554_p6 = scmp.lt.u32.totalorder %s1550_s29, %s1998_s11 }
 0x447   :  { %p1556_p7 = pnand %p1554_p6, %p1551_p5 }
 0x449   :  { %1559 = shalt.err (!%p1556_p7)
}
 0x44a   :  { %1261 = dma.vmem_to_hbm [thread:$0]  %s1259_s25, 16, %s1998_s11, [#allocation4]  }
 0x44b   :  { %1560 = dma.done.wait [#allocation4], 16  }
 0x44c   :  { %1561 = vsyncadd [#allocation4], 4294967280 }
 0x44d   :  { %1265 = vsyncpa [#allocation4], 1 }

</bundles_post_ra>
